<compile_context>
chip_gen: v7x
topology: tpu7x:2x2x1
jax: 0.10.0
libtpu: 0.0.40
codegen_flags: <defaults>
</compile_context>

<pallas_src>
import functools

import jax
import jax.numpy as jnp
import numpy as np
from jax.experimental import pallas as pl
from jax.experimental.pallas import tpu as pltpu


def _round_up(x, m):
    return ((x + m - 1) // m) * m


# ---------------------------------------------------------------------------
# Cached real-DFT matrix: [cos | sin] concatenated along lanes.  Frequency
# axis uses only the K = T//2 + 1 distinct bins (|FFT|^2 is symmetric about
# Nyquist) and is padded up to a multiple of 128 with copies of the DC column
# (cos = 1, sin = 0), so padded bins reproduce w_hat[0] and never change
# max/min.
# ---------------------------------------------------------------------------
@functools.lru_cache(maxsize=None)
def _dft_matrix(T: int):
    K = T // 2 + 1
    KP = _round_up(K, 128)
    t = np.arange(T, dtype=np.float64)
    k = np.arange(K, dtype=np.float64)
    ang = 2.0 * np.pi * np.outer(t, k) / float(T)
    cos_m = np.concatenate([np.cos(ang), np.ones((T, KP - K))], axis=1)
    sin_m = np.concatenate([np.sin(ang), np.zeros((T, KP - K))], axis=1)
    dft = np.concatenate([cos_m, sin_m], axis=1).astype(np.float32)  # (T, 2*KP)
    return jnp.asarray(dft), KP


# ---------------------------------------------------------------------------
# Kernels
# ---------------------------------------------------------------------------
def _accum_cos_tile(x_ref, y_ref, acc_ref):
    """Lane-wise accumulate (1 - cos(x[:, j], y[:, j])) into acc_ref (1, TN)."""
    j = pl.program_id(0)

    @pl.when(j == 0)
    def _():
        acc_ref[...] = jnp.zeros_like(acc_ref)

    x = x_ref[...]                                      # (D, TN) f32
    y = y_ref[...]                                      # (D, TN) f32
    eps = jnp.float32(1e-8)
    dot = jnp.sum(x * y, axis=0, keepdims=True)         # (1, TN)
    nx2 = jnp.sum(x * x, axis=0, keepdims=True)
    ny2 = jnp.sum(y * y, axis=0, keepdims=True)
    # matches torch.cosine_similarity: w12 / max(sqrt(w1*w2), eps)
    cos = dot * jax.lax.rsqrt(jnp.maximum(nx2 * ny2, eps * eps))
    acc_ref[...] += 1.0 - cos


def _fused_kernel(x_ref, y_ref, w_ref, dft_ref, out_ref, acc_ref, *, kp, inv_n):
    _accum_cos_tile(x_ref, y_ref, acc_ref)

    @pl.when(pl.program_id(0) == pl.num_programs(0) - 1)
    def _():
        # single cross-lane reduce of the lane-wise accumulator
        out_ref[0] = (0.5 * inv_n) * jnp.sum(acc_ref[...])
        # one (F, T) @ (T, 2*KP) MXU matmul -> [re | im]
        p = jnp.dot(w_ref[...], dft_ref[...],
                    preferred_element_type=jnp.float32)        # (F, 2*KP)
        sq = jnp.sum(p * p, axis=0, keepdims=True)             # (1, 2*KP)
        w_hat = sq[:, :kp] + sq[:, kp:]                        # (1, KP)
        out_ref[1] = jnp.max(w_hat) / jnp.min(w_hat) - 1.0


def _base_kernel(x_ref, y_ref, out_ref, acc_ref, *, inv_n):
    _accum_cos_tile(x_ref, y_ref, acc_ref)

    @pl.when(pl.program_id(0) == pl.num_programs(0) - 1)
    def _():
        out_ref[0] = (0.5 * inv_n) * jnp.sum(acc_ref[...])


# ---------------------------------------------------------------------------
# Jitted wrappers around pallas_call
# ---------------------------------------------------------------------------
def _pick_tile(n):
    return min(1024, _round_up(n, 128))


def _pad_cols_ones(a, n_padded):
    pad = n_padded - a.shape[1]
    if pad == 0:
        return a
    # identical padded columns -> cos == 1 -> (1 - cos) == 0 contribution
    return jnp.concatenate(
        [a, jnp.ones((a.shape[0], pad), dtype=a.dtype)], axis=1)


@functools.partial(jax.jit, static_argnames=("tn", "kp"))
def _kappa_loss_full(inputs, targets, w, dft, beta, *, tn, kp):
    d, n = inputs.shape
    f, t = w.shape
    n_padded = _round_up(n, tn)
    x_p = _pad_cols_ones(inputs, n_padded)
    y_p = _pad_cols_ones(targets, n_padded)
    grid = (n_padded // tn,)
    out = pl.pallas_call(
        functools.partial(_fused_kernel, kp=kp, inv_n=1.0 / float(n)),
        out_shape=jax.ShapeDtypeStruct((2,), jnp.float32),
        grid=grid,
        in_specs=[
            pl.BlockSpec((d, tn), lambda j: (0, j)),
            pl.BlockSpec((d, tn), lambda j: (0, j)),
            pl.BlockSpec((f, t), lambda j: (0, 0)),          # resident (constant block)
            pl.BlockSpec(dft.shape, lambda j: (0, 0)),       # resident (constant block)
        ],
        out_specs=pl.BlockSpec(memory_space=pltpu.MemorySpace.SMEM),
        scratch_shapes=[pltpu.VMEM((1, tn), jnp.float32)],
        compiler_params=pltpu.CompilerParams(
            dimension_semantics=("arbitrary",)),
    )(x_p, y_p, w, dft)
    base = out[0]
    loss = base + beta * out[1]
    return base, loss


@functools.partial(jax.jit, static_argnames=("tn",))
def _kappa_loss_base(inputs, targets, *, tn):
    d, n = inputs.shape
    n_padded = _round_up(n, tn)
    x_p = _pad_cols_ones(inputs, n_padded)
    y_p = _pad_cols_ones(targets, n_padded)
    grid = (n_padded // tn,)
    out = pl.pallas_call(
        functools.partial(_base_kernel, inv_n=1.0 / float(n)),
        out_shape=jax.ShapeDtypeStruct((1,), jnp.float32),
        grid=grid,
        in_specs=[
            pl.BlockSpec((d, tn), lambda j: (0, j)),
            pl.BlockSpec((d, tn), lambda j: (0, j)),
        ],
        out_specs=pl.BlockSpec(memory_space=pltpu.MemorySpace.SMEM),
        scratch_shapes=[pltpu.VMEM((1, tn), jnp.float32)],
        compiler_params=pltpu.CompilerParams(
            dimension_semantics=("arbitrary",)),
    )(x_p, y_p)
    base = out[0]
    return base, base


# ---------------------------------------------------------------------------
# Public API matching KappaLoss.forward(inputs, targets, w) -> (base, loss)
# ---------------------------------------------------------------------------
def kappa_loss(inputs, targets, w=None, beta=0.0):
    inputs = jnp.asarray(inputs, jnp.float32)
    targets = jnp.asarray(targets, jnp.float32)
    tn = _pick_tile(inputs.shape[1])
    if w is None:
        return _kappa_loss_base(inputs, targets, tn=tn)
    w = jnp.asarray(w, jnp.float32)
    dft, kp = _dft_matrix(w.shape[1])
    return _kappa_loss_full(inputs, targets, w, dft, jnp.float32(beta),
                            tn=tn, kp=kp)


# ---------------------------------------------------------------------------
# Pure-JAX reference (uses jnp.fft) for a sanity check.
# ---------------------------------------------------------------------------
def _ref_kappa_loss(inputs, targets, w, beta):
    eps = 1e-8
    dot = jnp.sum(inputs * targets, axis=0)
    n1 = jnp.sum(inputs * inputs, axis=0)
    n2 = jnp.sum(targets * targets, axis=0)
    cos = dot / jnp.sqrt(jnp.maximum(n1 * n2, eps * eps))
    base = 0.5 * jnp.mean(1.0 - cos)
    if w is None:
        return base, base
    w_hat = jnp.sum(jnp.abs(jnp.fft.fft(w, axis=1)) ** 2, axis=0)
    loss = base + beta * (jnp.max(w_hat) / jnp.min(w_hat) - 1.0)
    return base, loss


if __name__ == "__main__":
    key = jax.random.PRNGKey(0)
    k1, k2, k3 = jax.random.split(key, 3)

    D, N = 32, 200       # cosine reduces over D; N columns (padded to 256 lanes)
    F_, T = 8, 48        # filterbank: 8 filters of length 48
    beta = 0.1

    inputs = jax.random.normal(k1, (D, N), dtype=jnp.float32)
    targets = jax.random.normal(k2, (D, N), dtype=jnp.float32)
    w = jax.random.normal(k3, (F_, T), dtype=jnp.float32)

    base_loss, loss = kappa_loss(inputs, targets, w, beta=beta)
    base_only, loss_only = kappa_loss(inputs, targets, None, beta=beta)
    jax.block_until_ready((base_loss, loss, base_only, loss_only))

    ref_base, ref_loss = _ref_kappa_loss(inputs, targets, w, beta)
    assert jnp.allclose(base_loss, ref_base, rtol=1e-2, atol=1e-3), (base_loss, ref_base)
    assert jnp.allclose(loss, ref_loss, rtol=1e-2, atol=1e-3), (loss, ref_loss)
    assert jnp.allclose(base_only, ref_base, rtol=1e-2, atol=1e-3), (base_only, ref_base)
    assert jnp.allclose(loss_only, ref_base, rtol=1e-2, atol=1e-3), (loss_only, ref_base)

    print("KERNEL_OK")
</pallas_src>

<mosaic_0001>
module attributes {stable_mosaic.version = 11 : i64} {
  func.func @_fused_kernel(%arg0: i32, %arg1: memref<32x256xf32, #tpu.memory_space<vmem>>, %arg2: memref<32x256xf32, #tpu.memory_space<vmem>>, %arg3: memref<8x48xf32, #tpu.memory_space<vmem>>, %arg4: memref<48x256xf32, #tpu.memory_space<vmem>>, %arg5: memref<2xf32, #tpu.memory_space<smem>>, %arg6: memref<1x256xf32, #tpu.memory_space<vmem>>) attributes {dimension_semantics = [#tpu.dimension_semantics<arbitrary>], iteration_bounds = array<i64: 1>, scalar_prefetch = 0 : i64, scratch_operands = 1 : i64, tpu.core_type = #tpu.core_type<tc>, window_params = [{transform_indices = @transform_0, window_bounds = array<i64: 32, 256>}, {transform_indices = @transform_1, window_bounds = array<i64: 32, 256>}, {pipeline_mode = #tpu.pipeline_mode<synchronous>, transform_indices = @transform_2, window_bounds = array<i64: 8, 48>}, {pipeline_mode = #tpu.pipeline_mode<synchronous>, transform_indices = @transform_3, window_bounds = array<i64: 48, 256>}, {transform_indices = @transform_4, window_bounds = array<i64: 2>}]} {
    %c0_i32 = arith.constant 0 : i32
    %0 = arith.cmpi eq, %arg0, %c0_i32 : i32
    %1 = arith.extui %0 : i1 to i32
    %c0_i32_0 = arith.constant 0 : i32
    %2 = arith.cmpi ne, %1, %c0_i32_0 : i32
    scf.if %2 {
      %cst_15 = arith.constant 0.000000e+00 : f32
      %28 = vector.broadcast %cst_15 : f32 to vector<1x256xf32>
      %c0_16 = arith.constant 0 : index
      %c0_17 = arith.constant 0 : index
      %29 = vector.load %arg6[%c0_16, %c0_17] : memref<1x256xf32, #tpu.memory_space<vmem>>, vector<1x256xf32>
      tpu.vector_store %arg6[%c0_16, %c0_17], %28 {strides = array<i32>} : memref<1x256xf32, #tpu.memory_space<vmem>>, vector<1x256xf32>,
    } else {
    }
    %c0 = arith.constant 0 : index
    %c0_1 = arith.constant 0 : index
    %3 = vector.load %arg1[%c0, %c0_1] : memref<32x256xf32, #tpu.memory_space<vmem>>, vector<32x256xf32>
    %c0_2 = arith.constant 0 : index
    %c0_3 = arith.constant 0 : index
    %4 = vector.load %arg2[%c0_2, %c0_3] : memref<32x256xf32, #tpu.memory_space<vmem>>, vector<32x256xf32>
    %5 = arith.mulf %3, %4 : vector<32x256xf32>
    %cst = arith.constant dense<0.000000e+00> : vector<256xf32>
    %6 = vector.multi_reduction <add>, %5, %cst [0] : vector<32x256xf32> to vector<256xf32>
    %7 = vector.shape_cast %6 : vector<256xf32> to vector<1x256xf32>
    %8 = arith.mulf %3, %3 : vector<32x256xf32>
    %cst_4 = arith.constant dense<0.000000e+00> : vector<256xf32>
    %9 = vector.multi_reduction <add>, %8, %cst_4 [0] : vector<32x256xf32> to vector<256xf32>
    %10 = vector.shape_cast %9 : vector<256xf32> to vector<1x256xf32>
    %11 = arith.mulf %4, %4 : vector<32x256xf32>
    %cst_5 = arith.constant dense<0.000000e+00> : vector<256xf32>
    %12 = vector.multi_reduction <add>, %11, %cst_5 [0] : vector<32x256xf32> to vector<256xf32>
    %13 = vector.shape_cast %12 : vector<256xf32> to vector<1x256xf32>
    %14 = arith.mulf %10, %13 : vector<1x256xf32>
    %cst_6 = arith.constant 9.99999993E-9 : f32
    %cst_7 = arith.constant 9.99999993E-9 : f32
    %15 = arith.mulf %cst_6, %cst_7 : f32
    %16 = vector.broadcast %15 : f32 to vector<1x256xf32>
    %17 = arith.maximumf %14, %16 : vector<1x256xf32>
    %18 = math.rsqrt %17 : vector<1x256xf32>
    %19 = arith.mulf %7, %18 : vector<1x256xf32>
    %c0_8 = arith.constant 0 : index
    %c0_9 = arith.constant 0 : index
    %20 = vector.load %arg6[%c0_8, %c0_9] : memref<1x256xf32, #tpu.memory_space<vmem>>, vector<1x256xf32>
    %cst_10 = arith.constant 1.000000e+00 : f32
    %21 = vector.broadcast %cst_10 : f32 to vector<1x256xf32>
    %22 = arith.subf %21, %19 : vector<1x256xf32>
    %23 = arith.addf %20, %22 : vector<1x256xf32>
    %c0_11 = arith.constant 0 : index
    %c0_12 = arith.constant 0 : index
    %24 = vector.load %arg6[%c0_11, %c0_12] : memref<1x256xf32, #tpu.memory_space<vmem>>, vector<1x256xf32>
    tpu.vector_store %arg6[%c0_11, %c0_12], %23 {strides = array<i32>} : memref<1x256xf32, #tpu.memory_space<vmem>>, vector<1x256xf32>,
    %c0_i32_13 = arith.constant 0 : i32
    %25 = arith.cmpi eq, %arg0, %c0_i32_13 : i32
    %26 = arith.extui %25 : i1 to i32
    %c0_i32_14 = arith.constant 0 : i32
    %27 = arith.cmpi ne, %26, %c0_i32_14 : i32
    scf.if %27 {
      %c0_15 = arith.constant 0 : index
      %c0_16 = arith.constant 0 : index
      %28 = vector.load %arg6[%c0_15, %c0_16] : memref<1x256xf32, #tpu.memory_space<vmem>>, vector<1x256xf32>
      %29 = vector.shape_cast %28 : vector<1x256xf32> to vector<1x1x256xf32>
      %cst_17 = arith.constant dense<0.000000e+00> : vector<1xf32>
      %30 = vector.multi_reduction <add>, %29, %cst_17 [1, 2] : vector<1x1x256xf32> to vector<1xf32>
      %31 = vector.shape_cast %30 : vector<1xf32> to vector<1x1x1xf32>
      %32 = vector.extract %31[0, 0, 0] : f32 from vector<1x1x1xf32>
      %cst_18 = arith.constant 2.500000e-03 : f32
      %33 = arith.mulf %cst_18, %32 : f32
      %c0_19 = arith.constant 0 : index
      %34 = memref.load %arg5[%c0_19] : memref<2xf32, #tpu.memory_space<smem>>
      memref.store %33, %arg5[%c0_19] : memref<2xf32, #tpu.memory_space<smem>>
      %c0_20 = arith.constant 0 : index
      %c0_21 = arith.constant 0 : index
      %35 = vector.load %arg3[%c0_20, %c0_21] : memref<8x48xf32, #tpu.memory_space<vmem>>, vector<8x48xf32>
      %c0_22 = arith.constant 0 : index
      %c0_23 = arith.constant 0 : index
      %36 = vector.load %arg4[%c0_22, %c0_23] : memref<48x256xf32, #tpu.memory_space<vmem>>, vector<48x256xf32>
      %cst_24 = arith.constant dense<0.000000e+00> : vector<8x256xf32>
      %37 = tpu.matmul %35, %36, %cst_24 {dimension_numbers = #tpu.dot_dimension_numbers<[1], [0], [0], [1], [0, 0, 1, 1], [], []>} : vector<8x48xf32>, vector<48x256xf32>, vector<8x256xf32> -> vector<8x256xf32>
      %38 = arith.mulf %37, %37 : vector<8x256xf32>
      %cst_25 = arith.constant dense<0.000000e+00> : vector<256xf32>
      %39 = vector.multi_reduction <add>, %38, %cst_25 [0] : vector<8x256xf32> to vector<256xf32>
      %40 = vector.shape_cast %39 : vector<256xf32> to vector<1x256xf32>
      %41 = vector.extract_strided_slice %40 {offsets = [0, 0], sizes = [1, 128], strides = [1, 1]} : vector<1x256xf32> to vector<1x128xf32>
      %42 = vector.extract_strided_slice %40 {offsets = [0, 128], sizes = [1, 128], strides = [1, 1]} : vector<1x256xf32> to vector<1x128xf32>
      %43 = arith.addf %41, %42 : vector<1x128xf32>
      %44 = vector.shape_cast %43 : vector<1x128xf32> to vector<1x1x128xf32>
      %cst_26 = arith.constant dense<0xFF800000> : vector<1xf32>
      %45 = vector.multi_reduction <maximumf>, %44, %cst_26 [1, 2] : vector<1x1x128xf32> to vector<1xf32>
      %46 = vector.shape_cast %45 : vector<1xf32> to vector<1x1x1xf32>
      %47 = vector.extract %46[0, 0, 0] : f32 from vector<1x1x1xf32>
      %48 = vector.shape_cast %43 : vector<1x128xf32> to vector<1x1x128xf32>
      %cst_27 = arith.constant dense<0x7F800000> : vector<1xf32>
      %49 = vector.multi_reduction <minimumf>, %48, %cst_27 [1, 2] : vector<1x1x128xf32> to vector<1xf32>
      %50 = vector.shape_cast %49 : vector<1xf32> to vector<1x1x1xf32>
      %51 = vector.extract %50[0, 0, 0] : f32 from vector<1x1x1xf32>
      %52 = arith.divf %47, %51 : f32
      %cst_28 = arith.constant 1.000000e+00 : f32
      %53 = arith.subf %52, %cst_28 : f32
      %c1 = arith.constant 1 : index
      %54 = memref.load %arg5[%c1] : memref<2xf32, #tpu.memory_space<smem>>
      memref.store %53, %arg5[%c1] : memref<2xf32, #tpu.memory_space<smem>>
    } else {
    }
    return
  }
  func.func @transform_0(%arg0: i32) -> (i32, i32) {
    %c0_i32 = arith.constant 0 : i32
    %c0_i32_0 = arith.constant 0 : i32
    return %c0_i32, %arg0 : i32, i32
  }
  func.func @transform_1(%arg0: i32) -> (i32, i32) {
    %c0_i32 = arith.constant 0 : i32
    %c0_i32_0 = arith.constant 0 : i32
    return %c0_i32, %arg0 : i32, i32
  }
  func.func @transform_2(%arg0: i32) -> (i32, i32) {
    %c0_i32 = arith.constant 0 : i32
    %c0_i32_0 = arith.constant 0 : i32
    %c0_i32_1 = arith.constant 0 : i32
    return %c0_i32, %c0_i32_0 : i32, i32
  }
  func.func @transform_3(%arg0: i32) -> (i32, i32) {
    %c0_i32 = arith.constant 0 : i32
    %c0_i32_0 = arith.constant 0 : i32
    %c0_i32_1 = arith.constant 0 : i32
    return %c0_i32, %c0_i32_0 : i32, i32
  }
  func.func @transform_4(%arg0: i32) -> i32 {
    %c0_i32 = arith.constant 0 : i32
    %c0_i32_0 = arith.constant 0 : i32
    return %c0_i32 : i32
  }
}

</mosaic_0001>

<bundles_post_ra>
// kernel: _kappa_loss_full.1
= control target key start
LH: loop header
LB: loop body
LE: loop exit
PB: predicated region body
PF: predicated region fallthrough
CT: control target
= control target key end

     0   :  { %v22_v3 = vlaneseq  ;;  %v363_v8 = vmov 0.0   ;;  %s492_s0 = inlined_call_operand.vmem [shape: f32[32,256], index: 0, kind: input, shape index: {}]   ;;  %s493_s1 = inlined_call_operand.vmem [shape: f32[32,256], index: 1, kind: input, shape index: {}]   ;;  %s494_s2 = inlined_call_operand.vmem [shape: f32[8,48], index: 2, kind: input, shape index: {}]   ;;  %s495_s3 = inlined_call_operand.vmem [shape: f32[48,256], index: 3, kind: input, shape index: {}]   ;;  %s496_s4 = inlined_call_operand.vmem [shape: f32[2], index: 4, kind: output, shape index: {}]  }
   0x1   :  { %v189_v0 = vld [vmem:[%s495_s3 + $0x8] sm:$0xff]  ;;  %v191_v1 = vld [vmem:[%s495_s3 + $0x18] sm:$0xff]  ;;  %v188_v2 = vld [vmem:[%s495_s3] sm:$0xff]  ;;  %268 = vmatprep.mubr.f32.mxu0 %v363_v8 }
   0x2   :  { %v320_v4 = vpack.c.bf16 %v191_v1, %v189_v0  ;;  %v190_v5 = vld [vmem:[%s495_s3 + $0x10] sm:$0xff]  ;;  %v193_v6 = vld [vmem:[%s495_s3 + $0x28] sm:$0xff]  ;;  %v195_v7 = vld [vmem:[%s495_s3 + $0x38] sm:$0xff]  ;;  %vm419_vm0 = vcmp.lt.s32.totalorder %v22_v3, 256 }
   0x3   :  { %v322_v9 = vpack.c.bf16 %v190_v5, %v188_v2  ;;  %v324_v10 = vpack.c.bf16 %v195_v7, %v193_v6  ;;  %v192_v11 = vld [vmem:[%s495_s3 + $0x20] sm:$0xff]  ;;  %v194_v12 = vld [vmem:[%s495_s3 + $0x30] sm:$0xff]  ;;  %v197_v13 = vld [vmem:[%s495_s3 + $0x48] sm:$0xff]  ;;  %26 = vst.msk [vmem:[#allocation2] sm:$0x3] %vm419_vm0, %v363_v8 }
   0x4   :  { %321 = vmatprep.subr.bf16.mxu0 %v320_v4  ;;  %v199_v15 = vld [vmem:[%s495_s3 + $0x58] sm:$0xff]  ;;  %v196_v16 = vld [vmem:[%s495_s3 + $0x40] sm:$0xff]  ;;  %v198_v17 = vld [vmem:[%s495_s3 + $0x50] sm:$0xff]  ;;  %v326_v18 = vpack.c.bf16 %v194_v12, %v192_v11 }
   0x5   :  { %323 = vmatpush1.bf16.msra.mxu0 %v322_v9  ;;  %v27_v19 = vld [vmem:[%s492_s0] sm:$0xff]  ;;  %v28_v20 = vld [vmem:[%s492_s0 + $0x8] sm:$0xff]  ;;  %v29_v21 = vld [vmem:[%s492_s0 + $0x10] sm:$0xff]  ;;  %v328_v22 = vpack.c.bf16 %v199_v15, %v197_v13  ;;  %v330_v29 = vpack.c.bf16 %v198_v17, %v196_v16 }
   0x6   :  { %325 = vmatprep.subr.bf16.mxu0 %v324_v10  ;;  %v30_v23 = vld [vmem:[%s492_s0 + $0x18] sm:$0xff]  ;;  %v31_v24 = vld [vmem:[%s492_s0 + $0x20] sm:$0xff]  ;;  %v32_v25 = vld [vmem:[%s492_s0 + $0x28] sm:$0xff]  ;;  %v69_v26 = vmul.f32 %v27_v19, %v27_v19  ;;  %v70_v27 = vmul.f32 %v28_v20, %v28_v20  ;;  %v71_v28 = vmul.f32 %v29_v21, %v29_v21 }
   0x7   :  { %v33_v30 = vld [vmem:[%s492_s0 + $0x30] sm:$0xff]  ;;  %v34_v31 = vld [vmem:[%s492_s0 + $0x38] sm:$0xff]  ;;  %v35_v32 = vld [vmem:[%s493_s1] sm:$0xff]  ;;  %v72_v33 = vmul.f32 %v30_v23, %v30_v23  ;;  %v73_v34 = vmul.f32 %v31_v24, %v31_v24  ;;  %v74_v35 = vmul.f32 %v32_v25, %v32_v25 }
   0x8   :  { %v36_v36 = vld [vmem:[%s493_s1 + $0x8] sm:$0xff]  ;;  %v37_v37 = vld [vmem:[%s493_s1 + $0x10] sm:$0xff]  ;;  %v38_v38 = vld [vmem:[%s493_s1 + $0x18] sm:$0xff]  ;;  %v43_v39 = vmul.f32 %v35_v32, %v27_v19  ;;  %v75_v40 = vmul.f32 %v33_v30, %v33_v30  ;;  %v76_v41 = vmul.f32 %v34_v31, %v34_v31  ;;  %v77_v42 = vadd.f32 %v71_v28, %v69_v26 }
   0x9   :  { %327 = vmatpush1.bf16.msra.mxu0 %v326_v18  ;;  %v44_v43 = vmul.f32 %v36_v36, %v28_v20  ;;  %v45_v44 = vmul.f32 %v37_v37, %v29_v21  ;;  %v46_v45 = vmul.f32 %v38_v38, %v30_v23  ;;  %v86_v46 = vadd.f32 %v72_v33, %v70_v27  ;;  %v39_v47 = vld [vmem:[%s493_s1 + $0x20] sm:$0xff]  ;;  %v40_v48 = vld [vmem:[%s493_s1 + $0x28] sm:$0xff] }
   0xa   :  { %329 = vmatprep.subr.bf16.mxu0 %v328_v22  ;;  %v78_v49 = vadd.f32 %v77_v42, %v73_v34 }
   0xb   :  { %9 = vsyncpa [#allocation4], 0  ;;  %v47_v50 = vmul.f32 %v39_v47, %v31_v24  ;;  %v48_v51 = vmul.f32 %v40_v48, %v32_v25  ;;  %v87_v52 = vadd.f32 %v86_v46, %v74_v35  ;;  %vm200_vm1 = vcmask 392192   ;;  %v41_v53 = vld [vmem:[%s493_s1 + $0x30] sm:$0xff]  ;;  %v42_v58 = vld [vmem:[%s493_s1 + $0x38] sm:$0xff]  ;;  %s309_s22 = sshll.u32 %s496_s4, 4  ;;  %s310_s22 = int_to_ptr.vmem [resolvable:$true] %s309_s22 }
   0xc   :  { %v79_v54 = vadd.f32 %v78_v49, %v75_v40  ;;  %v95_v55 = vmul.f32 %v35_v32, %v35_v32  ;;  %v96_v56 = vmul.f32 %v36_v36, %v36_v36  ;;  %v97_v57 = vmul.f32 %v37_v37, %v37_v37  ;;  %v187_v63 = vld [vmem:[%s494_s2] sm:$0xff]  ;;  %s349_s26 = scalar_lea.vmem %s310_s22, 16  ;;  %p354_p1 = scmp.lt.s32.totalorder %s310_s22, %s310_s22 }
   0xd   :  { %331 = vmatpush1.bf16.msra.mxu0 %v330_v29  ;;  %v51_v59 = vadd.f32 %v45_v44, %v43_v39  ;;  %v60_v60 = vadd.f32 %v46_v45, %v44_v43  ;;  %v88_v61 = vadd.f32 %v87_v52, %v76_v41  ;;  %v98_v62 = vmul.f32 %v38_v38, %v38_v38  ;;  %p350_p0 = scmp.ne.s32.totalorder %s310_s22, %s349_s26  ;;  %p355_p2 = scmp.lt.s32.totalorder %s349_s26, %s349_s26 }
   0xe   :  { %v80_v0 = vrot.slane %v79_v54, 4  ;;  %v99_v1 = vmul.f32 %v39_v47, %v39_v47  ;;  %v100_v2 = vmul.f32 %v40_v48, %v40_v48  ;;  %v49_v4 = vmul.f32 %v41_v53, %v33_v30 }
   0xf   :  { %v89_v5 = vrot.slane %v88_v61, 4  ;;  %v101_v6 = vmul.f32 %v41_v53, %v41_v53  ;;  %v102_v8 = vmul.f32 %v42_v58, %v42_v58  ;;  %v103_v9 = vadd.f32 %v97_v57, %v95_v55  ;;  %p356_p3 = por %p355_p2, %p354_p1 }
  0x10   :  { %v81_v7 = vadd.f32 %v80_v0, %v79_v54  ;;  %v112_v10 = vadd.f32 %v98_v62, %v96_v56  ;;  %318 = vmatmul.mubr.msk.f32.vlgmr.msra.gmra.mrb[0].mxu0 %vm200_vm1, %v187_v63  ;;  %v50_v11 = vmul.f32 %v42_v58, %v34_v31  ;;  %v52_v12 = vadd.f32 %v51_v59, %v47_v50 }
  0x11   :  { %v61_v13 = vadd.f32 %v60_v60, %v48_v51  ;;  %v90_v15 = vadd.f32 %v89_v5, %v88_v61  ;;  %v104_v17 = vadd.f32 %v103_v9, %v99_v1  ;;  %v364_v56 = vmov 1966171168   ;;  %p357_p4 = pnand %p356_p3, %p350_p0 }
  0x12   :  { %v82_v16 = vrot.slane %v81_v7, 2  ;;  %v113_v18 = vadd.f32 %v112_v10, %v100_v2  ;;  %v53_v22 = vadd.f32 %v52_v12, %v49_v4  ;;  %v136_v57 = vunpack.c.l.s4 %v364_v56 }
  0x13   :  { %v91_v19 = vrot.slane %v90_v15, 2  ;;  %v105_v20 = vadd.f32 %v104_v17, %v101_v6  ;;  %v62_v23 = vadd.f32 %v61_v13, %v50_v11  ;;  %v139_v62 = vshrl.u32 %v22_v3, 7 }
  0x14   :  { %v114_v21 = vadd.f32 %v113_v18, %v102_v8  ;;  %v83_v24 = vadd.f32 %v82_v16, %v81_v7  ;;  %v54_v30 = vrot.slane %v53_v22, 4  ;;  %v137_v61 = vunpack.c.0.s8 %v136_v57  ;;  %v129_v8 = vld [vmem:[#allocation2] sm:$0x3] }
  0x15   :  { %v92_v25 = vadd.f32 %v91_v19, %v90_v15  ;;  %v106_v26 = vrot.slane %v105_v20, 4  ;;  %v63_v32 = vrot.slane %v62_v23, 4  ;;  %v163_v11 = vsub.s32 0, %v139_v62 }
  0x16   :  { %v115_v27 = vrot.slane %v114_v21, 4  ;;  %v84_v31 = vrot.slane %v83_v24, 1  ;;  %v55_v38 = vadd.f32 %v54_v30, %v53_v22  ;;  %v140_v5 = vsub.s32 %v137_v61, %v139_v62 }
  0x17   :  { %v107_v28 = vadd.f32 %v106_v26, %v105_v20  ;;  %v93_v33 = vrot.slane %v92_v25, 1  ;;  %v64_v39 = vadd.f32 %v63_v32, %v62_v23  ;;  %v167_v12 = vsub.s32 1, %v139_v62 }
  0x18   :  { %v116_v29 = vadd.f32 %v115_v27, %v114_v21  ;;  %v85_v40 = vadd.f32 %v84_v31, %v83_v24  ;;  %v56_v46 = vrot.slane %v55_v38, 2  ;;  %vm171_vm2 = vcmask 1040384  }
  0x19   :  { %v108_v34 = vrot.slane %v107_v28, 2  ;;  %v94_v41 = vadd.f32 %v93_v33, %v92_v25  ;;  %v65_v47 = vrot.slane %v64_v39, 2 }
  0x1a   :  { %v117_v35 = vrot.slane %v116_v29, 2  ;;  %v57_v52 = vadd.f32 %v56_v46, %v55_v38 }
  0x1b   :  { %v109_v36 = vadd.f32 %v108_v34, %v107_v28  ;;  %v66_v53 = vadd.f32 %v65_v47, %v64_v39 }
  0x1c   :  { %v118_v37 = vadd.f32 %v117_v35, %v116_v29  ;;  %v58_v54 = vrot.slane %v57_v52, 1 }
  0x1d   :  { %v110_v42 = vrot.slane %v109_v36, 1  ;;  %v67_v55 = vrot.slane %v66_v53, 1 }
  0x1e   :  { %v119_v43 = vrot.slane %v118_v37, 1  ;;  %v59_v58 = vadd.f32 %v58_v54, %v57_v52 }
  0x1f   :  { %v111_v44 = vadd.f32 %v110_v42, %v109_v36  ;;  %v68_v59 = vadd.f32 %v67_v55, %v66_v53 }
  0x20   :  { %v120_v45 = vadd.f32 %v119_v43, %v118_v37 }
  0x21   :  { %v121_v48 = vmul.f32 %v111_v44, %v85_v40 }
  0x22   :  { %v122_v49 = vmul.f32 %v120_v45, %v94_v41 }
  0x23   :  { %v123_v50 = vmax.f32 %v121_v48, 1e-16 }
  0x24   :  { %v124_v51 = vmax.f32 %v122_v49, 1e-16 }
  0x25   :  { %343 = vrsqrt.f32 %v123_v50 }
  0x26   :  { %345 = vrsqrt.f32 %v124_v51 }
  0x2f   :  { %v344_v60 = vpop.eup %343 }
  0x30   :  { %v346_v63 = vpop.eup %345  ;;  %v127_v0 = vmul.f32 %v344_v60, %v59_v58 }
  0x31   :  { %v128_v1 = vmul.f32 %v346_v63, %v68_v59 }
  0x32   :  { %v130_v2 = vsub.f32 1.0, %v127_v0 }
  0x33   :  { %v131_v4 = vsub.f32 1.0, %v128_v1 }
  0x35   :  { %v134_v6 = vcombine.low %v130_v2, %v131_v4 }
  0x37   :  { %v141_v7 = vrot.slane %v134_v6, %v140_v5 }
  0x39   :  { %v148_v9 = vrot.slane %v141_v7, %v140_v5 }
  0x3b   :  { %v150_v10 = vadd.f32 %v148_v9, %v129_v8 }
  0x3d   :  { %155 = vst.msk [vmem:[#allocation2] sm:$0x3] %vm419_vm0, %v150_v10 }
  0x44   :  { %v159_v13 = vld [vmem:[#allocation2] sm:$0x3] }
  0x45   :  { %v164_v15 = vrot.slane %v159_v13, %v163_v11  ;;  %v168_v16 = vrot.slane %v159_v13, %v167_v12 }
  0x47   :  { %v172_v3 = vsel %vm171_vm2, %v164_v15, 0.0  ;;  %v173_v17 = vsel %vm171_vm2, %v168_v16, 0.0 }
  0x48   :  { %v174_v18 = vadd.f32 %v173_v17, %v172_v3 }
  0x4a   :  { %175 = vadd.xlane.f32.xlu0 %v174_v18 }
  0xd7   :  { %v176_v33 = vpop.xlane.xlu0 %175 }
  0xd8   :  { %v177_v35 = vrot.slane %v176_v33, 4 }
  0xda   :  { %v178_v37 = vadd.f32 %v177_v35, %v176_v33 }
  0xdc   :  { %v179_v38 = vrot.slane %v178_v37, 2 }
  0xde   :  { %v180_v39 = vadd.f32 %v179_v38, %v178_v37 }
  0xe0   :  { %v181_v40 = vrot.slane %v180_v39, 1 }
  0xe2   :  { %v182_v41 = vadd.f32 %v181_v40, %v180_v39 }
  0xe3   :  { %v270_v19 = vpop.f32.mrb[0].mxu0 }
  0xe4   :  { %v275_v20 = vmul.f32 %v270_v19, %v270_v19  ;;  %v272_v21 = vpop.f32.mrb[1].mxu0  ;;  %332 = vpush %v182_v41 }
  0xe5   :  { %v276_v22 = vmul.f32 %v272_v21, %v272_v21 }
  0xe6   :  { %v277_v23 = vrot.slane %v275_v20, 4 }
  0xe7   :  { %v283_v24 = vrot.slane %v276_v22, 4 }
  0xe8   :  { %v278_v25 = vadd.f32 %v277_v23, %v275_v20 }
  0xe9   :  { %v284_v26 = vadd.f32 %v283_v24, %v276_v22 }
  0xea   :  { %v279_v14 = vrot.slane %v278_v25, 2 }
  0xeb   :  { %v285_v27 = vrot.slane %v284_v26, 2 }
  0xec   :  { %v280_v28 = vadd.f32 %v279_v14, %v278_v25 }
  0xed   :  { %v286_v29 = vadd.f32 %v285_v27, %v284_v26 }
  0xee   :  { %v281_v30 = vrot.slane %v280_v28, 1 }
  0xef   :  { %v287_v32 = vrot.slane %v286_v29, 1 }
  0xf0   :  { %v282_v31 = vadd.f32 %v281_v30, %v280_v28 }
  0xf1   :  { %v288_v34 = vadd.f32 %v287_v32, %v286_v29 }
  0xf3   :  { %v289_v36 = vadd.f32 %v288_v34, %v282_v31 }
  0xf5   :  { %293 = vmin.xlane.f32.xlu1 %v289_v36  ;;  %290 = vmax.xlane.f32.xlu0 %v289_v36 }
 0x115   :  { %s333_s1 = spop %332 }
 0x116   :  { %s184_s2 = smul.f32 0.0025, %s333_s1 }
 0x118   :  { %186 = sst [smem:[#allocation3]] %s184_s2 }
 0x182   :  { %v294_v42 = vpop.xlane.xlu1 %293  ;;  %v291_v43 = vpop.xlane.xlu0 %290 }
 0x183   :  { %334 = vpush %v291_v43 }
 0x184   :  { %336 = vpush %v294_v42 }
 0x1b4   :  { %s335_s3 = spop %334 }
 0x1b5   :  { %s337_s19 = spop %336 }
 0x1b6   :  { %v296_v44 = vstv %s337_s19 }
 0x1b7   :  { %347 = vrcp.f32 %v296_v44 }
 0x1c1   :  { %v348_v45 = vpop.eup %347 }
 0x1c2   :  { %338 = vpush %v348_v45 }
 0x1f3   :  { %s339_s23 = spop %338 }
 0x1f4   :  { %s299_s24 = smul.f32 %s339_s23, %s335_s3 }
 0x1f6   :  { %s319_s25 = sadd.f32 -1.0, %s299_s24 }
 0x1f8   :  { %302 = sst [smem:[#allocation3 + $0x1]] %s319_s25 }
 0x1f9   :  { %360 = shalt.err (!%p357_p4)
}
 0x1fa   :  { %s365_s27 = smov [#allocation3]  }
 0x1fb   :  { %312 = dma.smem_to_vmem %s365_s27, 16, %s310_s22, [#allocation4]  }
 0x1fc   :  { %361 = dma.done.wait [#allocation4], 16  }
 0x1fd   :  { %362 = vsyncadd [#allocation4], 4294967280 }
 0x1fe   :  { %316 = sfence }
 0x1ff   :  { %317 = vsyncpa [#allocation4], 1 }

</bundles_post_ra>
